<compile_context>
chip_gen: v7x
topology: tpu7x:2x2x1
jax: 0.10.0
libtpu: 0.0.40
codegen_flags: <defaults>
</compile_context>

<pallas_src>
import jax
import jax.numpy as jnp
from jax.experimental import pallas as pl
from jax.experimental.pallas import tpu as pltpu


# --------------------------------------------------------------------------- #
# Helpers
# --------------------------------------------------------------------------- #
def _round_up(n, m):
    return ((n + m - 1) // m) * m


def _pick_tile(extent, base, max_elems):
    """Largest multiple of `base` dividing `extent` (a multiple of base), <= max_elems."""
    cap = max(base, min(max_elems, extent))
    best = base
    t = base
    while t <= cap:
        if extent % t == 0:
            best = t
        t += base
    return best


def _usable_vmem_bytes():
    """Per-generation VMEM budget (75% of physical; conservative 64 MiB fallback)."""
    cap = 64 * 1024 * 1024
    try:
        cap = int(pltpu.get_tpu_info().vmem_capacity_bytes)
    except Exception:
        pass
    return (cap * 3) // 4


def _channel_conv_sigmoid(pooled, conv_w):
    """Conv1d(1,1,k,bias=False) over channels (cross-correlation, zero pad) + sigmoid.

    pooled: (B, C) f32, conv_w: (k,) f32 -> (B, C) f32 gate.
    """
    k = conv_w.shape[0]
    pad = (k - 1) // 2
    C = pooled.shape[1]
    padded = jnp.pad(pooled, ((0, 0), (pad, pad)))
    conv = jnp.zeros_like(pooled)
    for i in range(k):
        conv = conv + conv_w[i] * padded[:, i:i + C]
    return jax.nn.sigmoid(conv)


# --------------------------------------------------------------------------- #
# Path 1: fused, VMEM-resident single pass (read-once / write-once)
# --------------------------------------------------------------------------- #
def _eca_fused(x, conv_w, usable_vmem):
    B, C, H, W = x.shape
    HW = H * W
    HWp = _round_up(HW, 128)                      # lane-pad (zeros don't perturb the sum)
    k = int(conv_w.shape[0])
    pad = (k - 1) // 2
    inv_hw = 1.0 / float(HW)                      # divide by the TRUE spatial size
    out_dtype = x.dtype

    x_r = x.reshape(B, C, HW)
    if HWp != HW:
        x_r = jnp.pad(x_r, ((0, 0), (0, 0), (0, HWp - HW)))

    # Lane chunk for in-kernel loops: keeps every intermediate value vreg-friendly
    # (<= ~512 KiB as f32) instead of materialising the whole slab as one value.
    lane_chunk = _pick_tile(HWp, 128, max(128, (512 * 1024) // (4 * C)))
    n_chunks = HWp // lane_chunk

    def kernel(w_ref, x_ref, o_ref):
        # x_ref / o_ref: (C, HWp) VMEM slab of one batch (leading dim squeezed).
        # ---- global average pool over the (padded) spatial axis, f32 accum ----
        acc = jnp.zeros((C, 1), jnp.float32)
        for j in range(n_chunks):
            xc = x_ref[:, j * lane_chunk:(j + 1) * lane_chunk]
            acc = acc + jnp.sum(xc.astype(jnp.float32), axis=-1, keepdims=True)
        pooled = acc * inv_hw                                  # (C, 1) true mean

        # ---- k-tap channel conv (cross-correlation, zero padded) + sigmoid ----
        conv = jnp.zeros_like(pooled)
        for i in range(k):
            s = i - pad                                        # conv[c] += w[i] * pooled[c+s]
            if abs(s) >= C:
                continue
            if s == 0:
                tap = pooled
            elif s > 0:
                tap = jnp.concatenate(
                    [pooled[s:, :], jnp.zeros((s, 1), jnp.float32)], axis=0)
            else:
                m = -s
                tap = jnp.concatenate(
                    [jnp.zeros((m, 1), jnp.float32), pooled[:C - m, :]], axis=0)
            conv = conv + w_ref[i] * tap
        gate = jax.nn.sigmoid(conv).astype(out_dtype)          # (C, 1) in x dtype

        # ---- rescale the still-resident slab and write out ----
        for j in range(n_chunks):
            sl = slice(j * lane_chunk, (j + 1) * lane_chunk)
            o_ref[:, sl] = x_ref[:, sl] * gate

    out = pl.pallas_call(
        kernel,
        out_shape=jax.ShapeDtypeStruct((B, C, HWp), x.dtype),
        grid_spec=pltpu.PrefetchScalarGridSpec(
            num_scalar_prefetch=0,
            grid=(B,),
            in_specs=[
                pl.BlockSpec(memory_space=pltpu.MemorySpace.SMEM),   # conv weights
                pl.BlockSpec((None, C, HWp), lambda b: (b, 0, 0)),   # per-batch slab
            ],
            out_specs=pl.BlockSpec((None, C, HWp), lambda b: (b, 0, 0)),
        ),
        compiler_params=pltpu.CompilerParams(
            dimension_semantics=("parallel",),
            vmem_limit_bytes=int(usable_vmem)),
    )(conv_w, x_r)

    if HWp != HW:
        out = out[:, :, :HW]
    return out.reshape(B, C, H, W)


# --------------------------------------------------------------------------- #
# Path 2: two-pass fallback, (B*C) flattened onto the sublane axis
# --------------------------------------------------------------------------- #
def _eca_two_pass(x, conv_w, usable_vmem):
    B, C, H, W = x.shape
    HW = H * W
    R = B * C
    conv_w = conv_w.astype(jnp.float32)
    itemsize = x.dtype.itemsize
    sub = max(8, 32 // itemsize)                  # sublane packing: 8 f32 / 16 bf16 / 32 i8

    HW_pad = _round_up(HW, 128)
    R_pad = _round_up(R, sub)

    x_r = x.reshape(R, HW)
    if HW_pad != HW or R_pad != R:
        x_r = jnp.pad(x_r, ((0, R_pad - R), (0, HW_pad - HW)))

    # Per-tile budget derated from the per-generation VMEM limit: pass 2 holds
    # ~2x in + 2x out double-buffered tiles (+ gate), so /6 leaves headroom.
    tile_budget = max(min(usable_vmem // 6, 4 * 1024 * 1024), sub * 128 * itemsize)
    hw_cap = min(4096, tile_budget // (sub * itemsize))        # bound in-kernel unroll
    hw_tile = _pick_tile(HW_pad, 128, hw_cap)
    row_tile = _pick_tile(R_pad, sub, tile_budget // (hw_tile * itemsize))
    n_rows = R_pad // row_tile
    n_hw = HW_pad // hw_tile
    n_lane_chunks = hw_tile // 128

    # ---- Pass 1: per-row spatial sums, lane-wide f32 accumulator ------------
    def pool_kernel(x_ref, acc_ref):
        @pl.when(pl.program_id(1) == 0)
        def _():
            acc_ref[...] = jnp.zeros_like(acc_ref)
        acc = acc_ref[...]
        for j in range(n_lane_chunks):                         # pure VPU adds
            acc = acc + x_ref[:, j * 128:(j + 1) * 128].astype(jnp.float32)
        acc_ref[...] = acc

    partial = pl.pallas_call(
        pool_kernel,
        out_shape=jax.ShapeDtypeStruct((R_pad, 128), jnp.float32),
        grid_spec=pltpu.PrefetchScalarGridSpec(
            num_scalar_prefetch=0,
            grid=(n_rows, n_hw),
            in_specs=[pl.BlockSpec((row_tile, hw_tile), lambda r, t: (r, t))],
            out_specs=pl.BlockSpec((row_tile, 128), lambda r, t: (r, 0)),
        ),
        compiler_params=pltpu.CompilerParams(
            dimension_semantics=("parallel", "arbitrary"),
            vmem_limit_bytes=int(usable_vmem)),
    )(x_r)

    # ---- Glue: single cross-lane reduce, channel conv + sigmoid (tiny) ------
    pooled = (partial.sum(axis=-1)[:R] * (1.0 / float(HW))).reshape(B, C)
    gate = _channel_conv_sigmoid(pooled, conv_w)               # (B, C) f32
    gate = gate.astype(x.dtype).reshape(R, 1)                  # pre-cast to x dtype
    if R_pad != R:
        gate = jnp.pad(gate, ((0, R_pad - R), (0, 0)))

    # ---- Pass 2: lane-dense broadcast multiply ------------------------------
    def scale_kernel(gate_ref, x_ref, o_ref):
        o_ref[...] = x_ref[...] * gate_ref[...]

    out_p = pl.pallas_call(
        scale_kernel,
        out_shape=jax.ShapeDtypeStruct((R_pad, HW_pad), x.dtype),
        grid_spec=pltpu.PrefetchScalarGridSpec(
            num_scalar_prefetch=0,
            grid=(n_rows, n_hw),
            in_specs=[
                pl.BlockSpec((row_tile, 1), lambda r, t: (r, 0)),        # gate (per row block)
                pl.BlockSpec((row_tile, hw_tile), lambda r, t: (r, t)),  # x tile
            ],
            out_specs=pl.BlockSpec((row_tile, hw_tile), lambda r, t: (r, t)),
        ),
        compiler_params=pltpu.CompilerParams(
            dimension_semantics=("parallel", "parallel"),
            vmem_limit_bytes=int(usable_vmem)),
    )(gate, x_r)

    return out_p[:R, :HW].reshape(B, C, H, W)


# --------------------------------------------------------------------------- #
# Top-level: per-shape / per-generation path selection
# --------------------------------------------------------------------------- #
def eca_layer(x, conv_w):
    """x: (B, C, H, W). conv_w: (k,) Conv1d(1, 1, k, bias=False) weight."""
    B, C, H, W = x.shape
    HW = H * W
    conv_w = conv_w.astype(jnp.float32)
    itemsize = x.dtype.itemsize
    usable = _usable_vmem_bytes()

    sub = max(8, 32 // itemsize)
    hw_eff = _round_up(HW, 128)
    c_eff = _round_up(C, sub)
    slab = c_eff * hw_eff * itemsize               # one (padded) per-batch slab in VMEM
    lane_chunk = _pick_tile(hw_eff, 128, max(128, (512 * 1024) // (4 * C)))
    n_chunks = hw_eff // lane_chunk

    # Fused path needs 2x in + 2x out double-buffered slabs within the derated
    # budget (f32 chunk temporaries covered by the 20% headroom), a moderate
    # slab size, and a bounded in-kernel unroll.
    fused_ok = (slab <= 8 * 1024 * 1024
                and 4 * slab <= (usable * 4) // 5
                and n_chunks <= 256)
    if fused_ok:
        return _eca_fused(x, conv_w, usable)
    return _eca_two_pass(x, conv_w, usable)


if __name__ == "__main__":
    key = jax.random.PRNGKey(0)
    kx, kw = jax.random.split(key)

    B, C, H, W = 2, 4, 16, 16
    k_size = 3
    x = jax.random.normal(kx, (B, C, H, W), dtype=jnp.float32)

    # Deterministic Conv1d(1, 1, 3, bias=False) weight (kaiming-uniform style bound).
    bound = 1.0 / (1 * k_size) ** 0.5
    conv_w = jax.random.uniform(kw, (k_size,), minval=-bound, maxval=bound,
                                dtype=jnp.float32)

    # Auto-selected path (fused at this size) and the explicit two-pass fallback.
    out_fused = jax.block_until_ready(eca_layer(x, conv_w))
    out_tiled = jax.block_until_ready(_eca_two_pass(x, conv_w, _usable_vmem_bytes()))

    # Pure-JAX reference of the PyTorch forward.
    pooled_ref = jnp.mean(x, axis=(2, 3))                                # (B, C)
    pad = (k_size - 1) // 2
    padded_ref = jnp.pad(pooled_ref, ((0, 0), (pad, pad)))
    conv_ref = (conv_w[0] * padded_ref[:, 0:C]
                + conv_w[1] * padded_ref[:, 1:C + 1]
                + conv_w[2] * padded_ref[:, 2:C + 2])                    # (B, C)
    ref = x * jax.nn.sigmoid(conv_ref)[:, :, None, None]

    assert out_fused.shape == (B, C, H, W)
    assert jnp.allclose(out_fused, ref, atol=1e-5, rtol=1e-5), "fused path mismatch"
    assert jnp.allclose(out_tiled, ref, atol=1e-5, rtol=1e-5), "two-pass path mismatch"
    print("KERNEL_OK")
</pallas_src>

<mosaic_0001>
module attributes {stable_mosaic.version = 11 : i64} {
  func.func @kernel(%arg0: i32, %arg1: memref<3xf32, #tpu.memory_space<smem>>, %arg2: memref<1x4x256xf32, #tpu.memory_space<vmem>>, %arg3: memref<1x4x256xf32, #tpu.memory_space<vmem>>) attributes {dimension_semantics = [#tpu.dimension_semantics<parallel>], iteration_bounds = array<i64: 2>, scalar_prefetch = 0 : i64, scratch_operands = 0 : i64, tpu.core_type = #tpu.core_type<tc>, window_params = [{transform_indices = @transform_0, window_bounds = array<i64: 3>}, {transform_indices = @transform_1, window_bounds = array<i64: 1, 4, 256>}, {transform_indices = @transform_2, window_bounds = array<i64: 1, 4, 256>}]} {
    %cst = arith.constant 0.000000e+00 : f32
    %0 = vector.broadcast %cst : f32 to vector<4x1xf32>
    %c0 = arith.constant 0 : index
    %c0_0 = arith.constant 0 : index
    %c0_1 = arith.constant 0 : index
    %1 = vector.load %arg2[%c0, %c0_0, %c0_1] : memref<1x4x256xf32, #tpu.memory_space<vmem>>, vector<1x4x256xf32>
    %2 = vector.shape_cast %1 : vector<1x4x256xf32> to vector<4x256xf32>
    %cst_2 = arith.constant dense<0.000000e+00> : vector<4xf32>
    %3 = vector.multi_reduction <add>, %2, %cst_2 [1] : vector<4x256xf32> to vector<4xf32>
    %4 = vector.shape_cast %3 : vector<4xf32> to vector<4x1xf32>
    %5 = arith.addf %0, %4 : vector<4x1xf32>
    %cst_3 = arith.constant 3.906250e-03 : f32
    %6 = vector.broadcast %cst_3 : f32 to vector<4x1xf32>
    %7 = arith.mulf %5, %6 : vector<4x1xf32>
    %cst_4 = arith.constant 0.000000e+00 : f32
    %8 = vector.broadcast %cst_4 : f32 to vector<4x1xf32>
    %cst_5 = arith.constant 0.000000e+00 : f32
    %9 = vector.broadcast %cst_5 : f32 to vector<1x1xf32>
    %10 = vector.extract_strided_slice %7 {offsets = [0, 0], sizes = [3, 1], strides = [1, 1]} : vector<4x1xf32> to vector<3x1xf32>
    %11 = tpu.concatenate %9, %10 in 0 : vector<1x1xf32>, vector<3x1xf32> -> vector<4x1xf32>
    %c0_6 = arith.constant 0 : index
    %12 = memref.load %arg1[%c0_6] : memref<3xf32, #tpu.memory_space<smem>>
    %13 = vector.broadcast %12 : f32 to vector<4x1xf32>
    %14 = arith.mulf %13, %11 : vector<4x1xf32>
    %15 = arith.addf %8, %14 : vector<4x1xf32>
    %c1 = arith.constant 1 : index
    %16 = memref.load %arg1[%c1] : memref<3xf32, #tpu.memory_space<smem>>
    %17 = vector.broadcast %16 : f32 to vector<4x1xf32>
    %18 = arith.mulf %17, %7 : vector<4x1xf32>
    %19 = arith.addf %15, %18 : vector<4x1xf32>
    %20 = vector.extract_strided_slice %7 {offsets = [1, 0], sizes = [3, 1], strides = [1, 1]} : vector<4x1xf32> to vector<3x1xf32>
    %cst_7 = arith.constant 0.000000e+00 : f32
    %21 = vector.broadcast %cst_7 : f32 to vector<1x1xf32>
    %22 = tpu.concatenate %20, %21 in 0 : vector<3x1xf32>, vector<1x1xf32> -> vector<4x1xf32>
    %c2 = arith.constant 2 : index
    %23 = memref.load %arg1[%c2] : memref<3xf32, #tpu.memory_space<smem>>
    %24 = vector.broadcast %23 : f32 to vector<4x1xf32>
    %25 = arith.mulf %24, %22 : vector<4x1xf32>
    %26 = arith.addf %19, %25 : vector<4x1xf32>
    %27 = arith.negf %26 : vector<4x1xf32>
    %28 = math.exp %27 : vector<4x1xf32>
    %cst_8 = arith.constant 1.000000e+00 : f32
    %29 = vector.broadcast %cst_8 : f32 to vector<4x1xf32>
    %30 = arith.addf %29, %28 : vector<4x1xf32>
    %31 = arith.divf %29, %30 : vector<4x1xf32>
    %c0_9 = arith.constant 0 : index
    %c0_10 = arith.constant 0 : index
    %c0_11 = arith.constant 0 : index
    %32 = vector.load %arg2[%c0_9, %c0_10, %c0_11] : memref<1x4x256xf32, #tpu.memory_space<vmem>>, vector<1x4x256xf32>
    %33 = vector.shape_cast %32 : vector<1x4x256xf32> to vector<4x256xf32>
    %34 = vector.broadcast %31 : vector<4x1xf32> to vector<4x256xf32>
    %35 = arith.mulf %33, %34 : vector<4x256xf32>
    %c0_12 = arith.constant 0 : index
    %c0_13 = arith.constant 0 : index
    %c0_14 = arith.constant 0 : index
    %36 = vector.load %arg3[%c0_12, %c0_13, %c0_14] : memref<1x4x256xf32, #tpu.memory_space<vmem>>, vector<1x4x256xf32>
    %37 = vector.shape_cast %36 : vector<1x4x256xf32> to vector<4x256xf32>
    %38 = vector.shape_cast %35 : vector<4x256xf32> to vector<1x4x256xf32>
    tpu.vector_store %arg3[%c0_12, %c0_13, %c0_14], %38 {strides = array<i32>} : memref<1x4x256xf32, #tpu.memory_space<vmem>>, vector<1x4x256xf32>,
    return
  }
  func.func @transform_0(%arg0: i32) -> i32 {
    %c0_i32 = arith.constant 0 : i32
    %c0_i32_0 = arith.constant 0 : i32
    return %c0_i32 : i32
  }
  func.func @transform_1(%arg0: i32) -> (i32, i32, i32) {
    %c0_i32 = arith.constant 0 : i32
    %c0_i32_0 = arith.constant 0 : i32
    %c0_i32_1 = arith.constant 0 : i32
    return %arg0, %c0_i32, %c0_i32_0 : i32, i32, i32
  }
  func.func @transform_2(%arg0: i32) -> (i32, i32, i32) {
    %c0_i32 = arith.constant 0 : i32
    %c0_i32_0 = arith.constant 0 : i32
    %c0_i32_1 = arith.constant 0 : i32
    return %arg0, %c0_i32, %c0_i32_0 : i32, i32, i32
  }
}

</mosaic_0001>

<bundles_post_ra>
// kernel: tpu_custom_call.1
= control target key start
LH: loop header
LB: loop body
LE: loop exit
PB: predicated region body
PF: predicated region fallthrough
CT: control target
= control target key end

     0   :  { %7 = vsyncpa [#allocation5], 0  ;;  %s752_s0 = inlined_call_operand.hbm [shape: f32[3], index: 0, kind: input, shape index: {}]   ;;  %s753_s1 = inlined_call_operand.hbm [shape: f32[2,4,256], index: 1, kind: input, shape index: {}]   ;;  %s754_s2 = inlined_call_operand.hbm [shape: f32[2,4,256], index: 2, kind: output, shape index: {}]  }
   0x1   :  { %8 = vsyncpa [#allocation3], 0 }
   0x2   :  { %10 = vsyncpa [#allocation3 + $0x1], 0 }
   0x3   :  { %11 = vsyncpa [#allocation4], 0 }
   0x4   :  { %13 = vsyncpa [#allocation4 + $0x1], 0  ;;  %s543_s9 = smov 0   ;;  %s545_s10 = smov 0  }
   0x5   :  { %s547_s11 = smov 0   ;;  %s549_s12 = smov 0  }
   0x6 LB: > { %s564_s13 = sadd.s32 4294967295, %s521_s12   ;;  %s322_s14 = sadd.s32 4294967294, %s521_s12   ;;  %s521_s12 = sphi %s549_s12, %s775_s12   ;;  %s517_s11 = sphi %s547_s11, %s774_s11   ;;  %s513_s10 = sphi %s545_s10, %s773_s10   ;;  %s509_s9 = sphi %s543_s9, %s772_s9  }
   0x7   : > { %p60_p0 = scmp.ne.s32.totalorder %s513_s10, %s509_s9  ;;  %p755_p1 = scmp.eq.s32.totalorder %s564_s13, 0 }
   0x8   : > { %p90_p3 = scmp.eq.s32.totalorder %s322_s14, 1  ;;  %p323_p5 = scmp.ge.s32.totalorder %s521_s12, 1 }
   0x9   : > { %p573_p4 = por %p755_p1, %p60_p0  ;;  %p97_p7 = scmp.lt.s32.totalorder %s521_s12, 3 }
   0xa   : > { %p578_p6 = por %p90_p3, %p60_p0  ;;  %s589_s18 = sadd.s32 1, %s521_s12  }
   0xb   : > { %s758_s15 = scalar_select %p573_p4, 1, 0 }
   0xc   : > { %s759_s16 = scalar_select %p578_p6, 1, 0 }
   0xd   : > { %p583_p8 = pnand %p323_p5, %p97_p7  ;;  %s44_s19 = ssub.s32 %s521_s12, %s589_s18 }
   0xe   : > { %s47_s20 = sadd.s32 1, %s517_s11  ;;  %p602_p12 = scmp.eq.s32.totalorder %s44_s19, 0 }
   0xf   : > { %p351_p10 = pneg %p583_p8  ;;  %p54_p13 = scmp.ne.s32.totalorder %s517_s11, %s513_s10 }
  0x10   : > { %p55_p0 = scmp.eq.s32.totalorder %s521_s12, 0  ;;  %p364_p3 = scmp.lt.s32.totalorder %s521_s12, 2 }
  0x11   : > { %p598_p11 = pnand %p351_p10, %p755_p1  ;;  %s408_s25 = scalar_lea.hbm %s752_s0, 16 }
  0x12   : > { %p409_p5 = scmp.ne.s32.totalorder %s752_s0, %s408_s25  ;;  %p415_p1 = scmp.lt.u32.totalorder %s408_s25, %s752_s0 }
  0x13   : > { %p410_p7 = pneg %p598_p11 }
  0x15   : > { %p411_p10 = pnand %p410_p7, %p409_p5 }
  0x17   : > { %p412_p9 = pneg %p411_p10 }
  0x19   : > { %p417_p2 = pnand %p415_p1, %p412_p9 }
  0x1b   : > { %420 = shalt.err (!%p417_p2)
}
  0x1c   : > { %s523_s30 = smov [#allocation2]   ;;  %p56_p1 = por %p55_p0, %p54_p13 }
  0x1d   : > { %354 = dma.hbm_to_smem (!%p598_p11), %s752_s0, 16, %s523_s30, [#allocation5]  }
  0x1e   : > { %s629_s5 = scalar_select %p602_p12, %s517_s11, %s47_s20  }
  0x1f   : > { %p763_p2 = scmp.eq.s32.totalorder %s564_s13, 1  ;;  %s119_s7 = sand.u32 1, %s517_s11  }
  0x20   : > { %s341_s8 = sshll.u32 %s521_s12, 7  ;;  %s326_s14 = sshll.u32 %s119_s7, 3 }
  0x21   : > { %p641_p9 = por %p763_p2, %p54_p13  ;;  %s650_s23 = scalar_lea.hbm %s753_s1, %s341_s8 }
  0x22   : > { %s123_s20 = scalar_lea.vmem [#allocation6], %s326_s14  ;;  %p654_p11 = pnand %p364_p3, %p56_p1 }
  0x23   : > { %s764_s6 = scalar_select %p641_p9, 1, 0 }
  0x24   : > { %s131_s22 = sshll.u32 %s123_s20, 4  ;;  %s120_s25 = scalar_lea.sflag [#allocation3], %s119_s7  ;;  %s658_s22 = int_to_ptr.vmem [resolvable:$true] %s131_s22 }
  0x25   : > { %s421_s26 = scalar_lea.hbm %s650_s23, 128  ;;  %p423_p13 = pneg %p654_p11 }
  0x26   : > { %p422_p12 = scmp.ne.s32.totalorder %s650_s23, %s421_s26  ;;  %s426_s29 = scalar_lea.hbm %s753_s1, 256 }
  0x27   : > { %p427_p3 = scmp.lt.u32.totalorder %s650_s23, %s753_s1  ;;  %p428_p7 = scmp.lt.u32.totalorder %s426_s29, %s421_s26 }
  0x28   : > { %p424_p0 = pnand %p423_p13, %p422_p12  ;;  %p430_p1 = scmp.lt.u32.totalorder %s421_s26, %s650_s23 }
  0x29   : > { %p429_p10 = por %p428_p7, %p427_p3 }
  0x2a   : > { %p425_p5 = pneg %p424_p0 }
  0x2b   : > { %p431_p2 = por %p430_p1, %p429_p10 }
  0x2d   : > { %p432_p6 = pnand %p431_p2, %p425_p5 }
  0x2f   : > { %435 = shalt.err (!%p432_p6)
}
  0x30   : > { %s436_s4 = scalar_lea.vmem %s658_s22, 128  ;;  %s524_s7 = smov [#allocation6]  }
  0x31   : > { %p437_p12 = scmp.ne.s32.totalorder %s658_s22, %s436_s4  ;;  %s441_s8 = sshll.u32 %s524_s7, 4  ;;  %s442_s8 = int_to_ptr.vmem [resolvable:$false] %s441_s8 }
  0x32   : > { %s443_s14 = scalar_lea.vmem %s442_s8, 256  ;;  %p444_p4 = scmp.lt.s32.totalorder %s658_s22, %s442_s8 }
  0x33   : > { %p439_p0 = pnand %p437_p12, %p423_p13  ;;  %p445_p3 = scmp.lt.s32.totalorder %s443_s14, %s436_s4 }
  0x35   : > { %p440_p9 = pneg %p439_p0  ;;  %p446_p7 = por %p445_p3, %p444_p4 }
  0x37   : > { %p447_p10 = pnand %p446_p7, %p440_p9 }
  0x39   : > { %450 = shalt.err (!%p447_p10)
}
  0x3a   : > { %358 = dma.hbm_to_vmem [thread:$0]  (!%p654_p11), %s650_s23, 128, %s658_s22, %s120_s25  }
  0x3b   : > { %140 = sbr.rel (%p583_p8) target bundleno = 404 (0x194), region = 28  ;;  %p766_p6 = scmp.eq.s32.totalorder (!%p583_p8), %s564_s13, 0 }
  0x42   : > { %496 = dma.done.wait (%p766_p6), [#allocation5], 16   ;;  %p767_p13 = pmov %p766_p6 }
  0x43   : > { %s692_s19 = sand.u32 1, %s513_s10   ;;  %p768_p4 = scmp.ne.s32.totalorder %s758_s15, 0 }
  0x44   : > { %498 = vsyncadd (%p767_p13), [#allocation5], 4294967280  ;;  %s331_s21 = sshll.u32 %s692_s19, 3  ;;  %s147_s20 = scalar_lea.sflag [#allocation3], %s692_s19 }
  0x45   : > { %s150_s23 = scalar_lea.vmem [#allocation6], %s331_s21 }
  0x46   : > { %500 = dma.done.wait (%p768_p4), %s147_s20, 128  }
  0x47   : > { %502 = vsyncadd (%p768_p4), %s147_s20, 4294967168 }
  0x48   : > { %155 = sfence }
  0x49   : > { %v172_v0 = vld [vmem:[%s150_s23] sm:$0xff]  ;;  %vm176_vm0 = vcmask 1043456   ;;  %v525_v5 = vmov 0   ;;  %s189_s17 = sld [smem:[#allocation2]]  ;;  %s333_s22 = sld [smem:[#allocation2 + $0x1]]  ;;  %vm187_vm1 = vcmask 1040384   ;;  %v218_v26 = vlaneseq }
  0x4a   : > { %v174_v1 = vcombine.high %v172_v0, %v172_v0  ;;  %v177_v2 = vsel %vm176_vm0, %v172_v0, 0.0  ;;  %402 = vset.pattern.permute.xlu0 %v525_v5  ;;  %s334_s24 = sld [smem:[#allocation2 + $0x2]]  ;;  %vm199_vm2 = vcmask 1042432   ;;  %v526_v24 = vmov 839922192   ;;  %s342_s15 = sshll.u32 %s564_s13, 7 }
  0x4b   : > { %v216_v25 = vunpack.c.l.s4 %v526_v24  ;;  %v219_v28 = vshrl.u32 %v218_v26, 7  ;;  %s171_s25 = scalar_lea.vmem [#allocation7], %s331_s21  ;;  %s708_s29 = scalar_lea.hbm %s754_s2, %s342_s15 }
  0x4c   : > { %v178_v3 = vsel %vm176_vm0, %v174_v1, 0.0  ;;  %s240_s26 = sshll.u32 %s171_s25, 4  ;;  %s226_s30 = scalar_lea.sflag [#allocation4], %s692_s19  ;;  %s710_s26 = int_to_ptr.vmem [resolvable:$true] %s240_s26 }
  0x4d   : > { %v179_v4 = vadd.f32 %v178_v3, %v177_v2  ;;  %v217_v27 = vunpack.c.0.s8 %v216_v25  ;;  %s451_s3 = scalar_lea.vmem %s710_s26, 128  ;;  %p769_p9 = scmp.ne.s32.totalorder %s764_s6, 0 }
  0x4e   : > { %p452_p8 = scmp.ne.s32.totalorder %s710_s26, %s451_s3  ;;  %s527_s13 = smov [#allocation7]  }
  0x4f   : > { %180 = vadd.xlane.f32.xlu0 %v179_v4  ;;  %v190_v8 = vstv %s189_s17  ;;  %v194_v9 = vstv %s333_s22  ;;  %v220_v29 = vsub.s32 %v217_v27, %v219_v28  ;;  %s455_s4 = sshll.u32 %s527_s13, 4  ;;  %s456_s4 = int_to_ptr.vmem [resolvable:$false] %s455_s4 }
  0x50   : > { %v202_v12 = vstv %s334_s24  ;;  %p453_p11 = pnand %p452_p8, %p769_p9  ;;  %s457_s7 = scalar_lea.vmem %s456_s4, 256 }
  0x51   : > { %p458_p1 = scmp.lt.s32.totalorder %s710_s26, %s456_s4  ;;  %p459_p2 = scmp.lt.s32.totalorder %s457_s7, %s451_s3 }
  0x52   : > { %p454_p5 = pneg %p453_p11 }
  0x53   : > { %p460_p12 = por %p459_p2, %p458_p1 }
  0x55   : > { %p461_p0 = pnand %p460_p12, %p454_p5 }
  0xdc   : > { %v181_v6 = vpop.xlane.xlu0 %180 }
  0xdd   : > { %v183_v7 = vmul.f32 0.00390625, %v181_v6 }
  0xdf   : > { %v185_v10 = vrot.slane %v183_v7, 7  ;;  %v197_v11 = vrot.slane %v183_v7, 1  ;;  %v195_v16 = vmul.f32 %v194_v9, %v183_v7 }
  0xe1   : > { %v188_v13 = vsel %vm187_vm1, 0.0, %v185_v10  ;;  %v200_v14 = vsel %vm199_vm2, %v197_v11, 0.0 }
  0xe2   : > { %v191_v15 = vmul.f32 %v190_v8, %v188_v13  ;;  %v203_v18 = vmul.f32 %v202_v12, %v200_v14 }
  0xe4   : > { %v196_v17 = vadd.f32 %v195_v16, %v191_v15 }
  0xe6   : > { %v204_v19 = vadd.f32 %v203_v18, %v196_v17 }
  0xe8   : > { %v335_v20 = vmul.f32 -1.442695, %v204_v19 }
  0xea   : > { %404 = vpow2.f32 %v335_v20 }
  0xf4   : > { %v405_v21 = vpop.eup %404 }
  0xf5   : > { %v208_v22 = vadd.f32 1.0, %v405_v21 }
  0xf7   : > { %406 = vrcp.f32 %v208_v22 }
 0x101   : > { %v407_v23 = vpop.eup %406 }
 0x102   : > { %213 = vperm.xlu0 %402, %v407_v23  }
 0x181   : > { %v214_v30 = vpop.permute.xlu0 %213 }
 0x182   : > { %v221_v31 = vrot.slane %v214_v30, %v220_v29 }
 0x184   : > { %v223_v32 = vmul.f32 %v221_v31, %v172_v0 }
 0x186   : > { %224 = vst [vmem:[%s171_s25] sm:$0xff] %v223_v32 }
 0x187   : > { %464 = shalt.err (!%p461_p0)
}
 0x188   : > { %s465_s8 = scalar_lea.hbm %s708_s29, 128  ;;  %s469_s21 = scalar_lea.hbm %s754_s2, 256 }
 0x189   : > { %p466_p3 = scmp.ne.s32.totalorder %s708_s29, %s465_s8  ;;  %p470_p6 = scmp.lt.u32.totalorder %s708_s29, %s754_s2 }
 0x18a   : > { %p471_p13 = scmp.lt.u32.totalorder %s469_s21, %s465_s8  ;;  %p473_p8 = scmp.lt.u32.totalorder %s465_s8, %s708_s29 }
 0x18b   : > { %p467_p7 = pnand %p466_p3, %p769_p9 }
 0x18c   : > { %p472_p4 = por %p471_p13, %p470_p6 }
 0x18d   : > { %p468_p10 = pneg %p467_p7 }
 0x18e   : > { %p474_p11 = por %p473_p8, %p472_p4 }
 0x190   : > { %p475_p5 = pnand %p474_p11, %p468_p10 }
 0x192   : > { %478 = shalt.err (!%p475_p5)
}
 0x193   : > { %349 = dma.vmem_to_hbm [thread:$0]  (%p769_p9), %s710_s26, 128, %s708_s29, %s226_s30  }
 0x194 PF: > { %s252_s17 = sand.u32 1, %s509_s9   ;;  %p770_p1 = scmp.ne.s32.totalorder %s759_s16, 0 }
 0x195   : > { %p771_p2 = scmp.ge.s32.totalorder %s521_s12, 2  ;;  %s253_s22 = scalar_lea.sflag [#allocation4], %s252_s17 }
 0x197   : > { %p360_p12 = pnand %p771_p2, %p770_p1 }
 0x199   : > { %504 = dma.done.wait (!%p360_p12), %s253_s22, 128  }
 0x19a   : > { %506 = vsyncadd (!%p360_p12), %s253_s22, 4294967168  ;;  %p16_p0 = scmp.ge.s32.totalorder %s589_s18, 4   ;;  %s772_s9 = smov %s513_s10 }
 0x19b   : > { %s773_s10 = smov %s517_s11  ;;  %s774_s11 = smov %s629_s5 }
 0x19c   : > { %s775_s12 = smov %s589_s18  ;;  %18 = sbr.rel (!%p16_p0) target bundleno = 6 (0x6), region = 78 }
 0x1a3   :  { %258 = vsyncpa [#allocation3], 1 }
 0x1a4   :  { %260 = vsyncpa [#allocation3 + $0x1], 1 }
 0x1a5   :  { %261 = vsyncpa [#allocation4], 1 }
 0x1a6   :  { %263 = vsyncpa [#allocation4 + $0x1], 1 }
 0x1a7   :  { %264 = vsyncpa [#allocation5], 1 }
 0x1a8   :  { %266 = vsyncpa [#allocation5 + $0x1], 1 }

</bundles_post_ra>
